<compile_context>
chip_gen: v7x
topology: tpu7x:2x2x1
jax: 0.10.0
libtpu: 0.0.40
codegen_flags: <defaults>
</compile_context>

<pallas_src>
import jax
import jax.numpy as jnp
from jax import lax
from jax.experimental import pallas as pl
from jax.experimental.pallas import tpu as pltpu


def _make_kernel(D, tile_d, d_ragged):
    """Kernel closure over static dims; grid = (batch tiles, D tiles)."""

    def kernel(x_ref, w_ref, b_ref, o_ref):
        k = pl.program_id(1)                       # D-tile index (reduction axis)

        @pl.when(k == 0)
        def _():                                   # init resident f32 accumulator
            o_ref[...] = jnp.zeros_like(o_ref)

        x = x_ref[...].astype(jnp.float32)         # (tile_b, tile_d), f32 accum
        w = w_ref[...].astype(jnp.float32)         # (1, tile_d)
        p = x * w
        if d_ragged:
            # Mask the ragged last D block so garbage columns never enter the sum.
            col = k * tile_d + lax.broadcasted_iota(jnp.int32, p.shape, 1)
            p = jnp.where(col < D, p, 0.0)
        o_ref[...] += jnp.sum(p, axis=-1, keepdims=True)   # (tile_b, 1)

        @pl.when(k == pl.num_programs(1) - 1)
        def _():                                   # finalize: bias + sigmoid (EUP)
            o_ref[...] = jax.nn.sigmoid(o_ref[...] + b_ref[0])

    return kernel


def _default_vmem_budget_bytes():
    """Per-generation working-set budget (inputs double-buffered + output)."""
    try:
        kind = jax.devices()[0].device_kind.lower()
    except Exception:
        kind = ""
    if "v5 lite" in kind or "v5e" in kind or "v5lite" in kind:
        return 12 << 20      # v5e scoped-VMEM default is 16 MiB
    return 22 << 20          # v6e / v7x (32 MiB scoped default; 64 MiB phys on v7x)


def linear_probe(x, weight, bias, *, vmem_budget_bytes=None):
    """sigmoid(x @ weight.T + bias).  x: (..., D) f32/bf16, weight: (1, D), bias: (1,)."""
    orig_shape = x.shape
    D = orig_shape[-1]
    if x.dtype.name not in ("float32", "bfloat16"):
        x = x.astype(jnp.float32)
    x2 = x.reshape(-1, D)
    B = x2.shape[0]
    sb = x2.dtype.itemsize                              # streamed bytes/elem (2 or 4)

    w = jnp.asarray(weight).reshape(1, D).astype(x2.dtype)
    b = jnp.asarray(bias).reshape(1).astype(jnp.float32)

    budget = _default_vmem_budget_bytes() if vmem_budget_bytes is None else int(vmem_budget_bytes)

    # Per-row VMEM cost: 2 x-buffers of tile_d elems + output block (padded to
    # 128 lanes in VMEM, double-buffered) = 2*128*4 bytes/row.
    out_row_pad = 2 * 128 * 4
    rows_budget = budget // (2 * D * sb + out_row_pad)

    if rows_budget >= 128:
        # Normal path: full feature dim per row tile.
        tile_d = D
        tile_b = B if B <= rows_budget else (rows_budget // 128) * 128
    else:
        # Very wide D: keep a modest row tile and tile the reduction axis too.
        tile_b = B if B <= 256 else 256
        t = ((budget - out_row_pad * tile_b) // max(2 * tile_b * sb, 1)) // 128 * 128
        tile_d = min(D, max(128, t))

    grid_b = pl.cdiv(B, tile_b)
    grid_d = pl.cdiv(D, tile_d)
    d_ragged = (D % tile_d) != 0

    # Explicit VMEM budget (documents the working set; stays within every
    # generation's scoped default / physical VMEM).
    need = (2 * tile_b * tile_d * sb          # streamed x (double-buffered)
            + 2 * 8 * tile_d * sb             # W tile (sublane-padded, 2 bufs)
            + out_row_pad * tile_b            # resident output block (2 bufs)
            + (1 << 16))
    vmem_limit = int(min(max(need + (4 << 20), 16 << 20), 56 << 20))

    kernel = _make_kernel(D, tile_d, d_ragged)

    out = pl.pallas_call(
        kernel,
        out_shape=jax.ShapeDtypeStruct((B, 1), jnp.float32),
        grid_spec=pltpu.PrefetchScalarGridSpec(
            num_scalar_prefetch=0,
            grid=(grid_b, grid_d),
            in_specs=[
                pl.BlockSpec((tile_b, tile_d), lambda i, k: (i, k)),   # streamed x
                pl.BlockSpec((1, tile_d), lambda i, k: (0, k)),        # weight tile
                pl.BlockSpec(memory_space=pltpu.MemorySpace.SMEM),     # bias scalar
            ],
            out_specs=pl.BlockSpec((tile_b, 1), lambda i, k: (i, 0)),  # (B,1) column
        ),
        compiler_params=pltpu.CompilerParams(
            dimension_semantics=("parallel", "arbitrary"),  # batch tiles // cores
            vmem_limit_bytes=vmem_limit,
        ),
    )(x2, w, b)

    return out.reshape(orig_shape[:-1] + (1,))


def _ref(x, w, b):
    xf = x.astype(jnp.float32)
    wf = jnp.asarray(w).reshape(1, -1).astype(x.dtype).astype(jnp.float32)
    bf = jnp.asarray(b).reshape(1).astype(jnp.float32)
    return jax.nn.sigmoid(jnp.sum(xf * wf, axis=-1, keepdims=True) + bf)


if __name__ == "__main__":
    batch, input_dim = 8, 32

    key = jax.random.PRNGKey(0)
    kx, kw, kb = jax.random.split(key, 3)

    # Deterministic init mimicking nn.Linear(input_dim, 1).
    bound = 1.0 / (input_dim ** 0.5)
    weight = jax.random.uniform(kw, (1, input_dim), jnp.float32, -bound, bound)
    bias = jax.random.uniform(kb, (1,), jnp.float32, -bound, bound)
    x = jax.random.normal(kx, (batch, input_dim), jnp.float32)

    # 1) f32 streaming, single tile — exact parity with the reference.
    out = linear_probe(x, weight, bias)
    jax.block_until_ready(out)
    assert out.shape == (batch, 1)
    assert jnp.allclose(out, _ref(x, weight, bias), atol=1e-5, rtol=1e-5)

    # 2) bf16-streamed activations (recommended prod path), f32 accumulation.
    x_bf = x.astype(jnp.bfloat16)
    out_bf = linear_probe(x_bf, weight, bias)
    jax.block_until_ready(out_bf)
    assert jnp.allclose(out_bf, _ref(x_bf, weight, bias), atol=1e-4, rtol=1e-4)

    # 3) Multi-tile batch with ragged last block (tiny budget override).
    x2 = jax.random.normal(jax.random.PRNGKey(1), (260, 384), jnp.float32)
    w2 = jax.random.uniform(kw, (1, 384), jnp.float32, -0.05, 0.05)
    out2 = linear_probe(x2, w2, bias, vmem_budget_bytes=768 * 1024)
    jax.block_until_ready(out2)
    assert jnp.allclose(out2, _ref(x2, w2, bias), atol=1e-5, rtol=1e-5)

    # 4) Wide-D fallback: D tiled (reduction grid axis) with ragged, masked tail.
    x3 = jax.random.normal(jax.random.PRNGKey(2), (300, 300), jnp.float32)
    w3 = jax.random.uniform(kb, (1, 300), jnp.float32, -0.05, 0.05)
    out3 = linear_probe(x3, w3, bias, vmem_budget_bytes=256 * 1024)
    jax.block_until_ready(out3)
    assert jnp.allclose(out3, _ref(x3, w3, bias), atol=1e-5, rtol=1e-5)

    print("KERNEL_OK")
</pallas_src>

<mosaic_0001>
module attributes {stable_mosaic.version = 11 : i64} {
  func.func @kernel(%arg0: i32, %arg1: i32, %arg2: memref<8x32xf32, #tpu.memory_space<vmem>>, %arg3: memref<1x32xf32, #tpu.memory_space<vmem>>, %arg4: memref<1xf32, #tpu.memory_space<smem>>, %arg5: memref<8x1xf32, #tpu.memory_space<vmem>>) attributes {dimension_semantics = [#tpu.dimension_semantics<parallel>, #tpu.dimension_semantics<arbitrary>], iteration_bounds = array<i64: 1, 1>, scalar_prefetch = 0 : i64, scratch_operands = 0 : i64, tpu.core_type = #tpu.core_type<tc>, window_params = [{transform_indices = @transform_0, window_bounds = array<i64: 8, 32>}, {transform_indices = @transform_1, window_bounds = array<i64: 1, 32>}, {transform_indices = @transform_2, window_bounds = array<i64: 1>}, {transform_indices = @transform_3, window_bounds = array<i64: 8, 1>}]} {
    %c0_i32 = arith.constant 0 : i32
    %0 = arith.cmpi eq, %arg1, %c0_i32 : i32
    %1 = arith.extui %0 : i1 to i32
    %c0_i32_0 = arith.constant 0 : i32
    %2 = arith.cmpi ne, %1, %c0_i32_0 : i32
    scf.if %2 {
      %cst_10 = arith.constant 0.000000e+00 : f32
      %15 = vector.broadcast %cst_10 : f32 to vector<8x1xf32>
      %c0_11 = arith.constant 0 : index
      %c0_12 = arith.constant 0 : index
      %16 = vector.load %arg5[%c0_11, %c0_12] : memref<8x1xf32, #tpu.memory_space<vmem>>, vector<8x1xf32>
      tpu.vector_store %arg5[%c0_11, %c0_12], %15 {strides = array<i32>} : memref<8x1xf32, #tpu.memory_space<vmem>>, vector<8x1xf32>,
    } else {
    }
    %c0 = arith.constant 0 : index
    %c0_1 = arith.constant 0 : index
    %3 = vector.load %arg2[%c0, %c0_1] : memref<8x32xf32, #tpu.memory_space<vmem>>, vector<8x32xf32>
    %c0_2 = arith.constant 0 : index
    %c0_3 = arith.constant 0 : index
    %4 = vector.load %arg3[%c0_2, %c0_3] : memref<1x32xf32, #tpu.memory_space<vmem>>, vector<1x32xf32>
    %5 = vector.broadcast %4 : vector<1x32xf32> to vector<8x32xf32>
    %6 = arith.mulf %3, %5 : vector<8x32xf32>
    %c0_4 = arith.constant 0 : index
    %c0_5 = arith.constant 0 : index
    %7 = vector.load %arg5[%c0_4, %c0_5] : memref<8x1xf32, #tpu.memory_space<vmem>>, vector<8x1xf32>
    %cst = arith.constant dense<0.000000e+00> : vector<8xf32>
    %8 = vector.multi_reduction <add>, %6, %cst [1] : vector<8x32xf32> to vector<8xf32>
    %9 = vector.shape_cast %8 : vector<8xf32> to vector<8x1xf32>
    %10 = arith.addf %7, %9 : vector<8x1xf32>
    %c0_6 = arith.constant 0 : index
    %c0_7 = arith.constant 0 : index
    %11 = vector.load %arg5[%c0_6, %c0_7] : memref<8x1xf32, #tpu.memory_space<vmem>>, vector<8x1xf32>
    tpu.vector_store %arg5[%c0_6, %c0_7], %10 {strides = array<i32>} : memref<8x1xf32, #tpu.memory_space<vmem>>, vector<8x1xf32>,
    %c0_i32_8 = arith.constant 0 : i32
    %12 = arith.cmpi eq, %arg1, %c0_i32_8 : i32
    %13 = arith.extui %12 : i1 to i32
    %c0_i32_9 = arith.constant 0 : i32
    %14 = arith.cmpi ne, %13, %c0_i32_9 : i32
    scf.if %14 {
      %c0_10 = arith.constant 0 : index
      %c0_11 = arith.constant 0 : index
      %15 = vector.load %arg5[%c0_10, %c0_11] : memref<8x1xf32, #tpu.memory_space<vmem>>, vector<8x1xf32>
      %c0_12 = arith.constant 0 : index
      %16 = memref.load %arg4[%c0_12] : memref<1xf32, #tpu.memory_space<smem>>
      %17 = vector.broadcast %16 : f32 to vector<8x1xf32>
      %18 = arith.addf %15, %17 : vector<8x1xf32>
      %19 = arith.negf %18 : vector<8x1xf32>
      %20 = math.exp %19 : vector<8x1xf32>
      %cst_13 = arith.constant 1.000000e+00 : f32
      %21 = vector.broadcast %cst_13 : f32 to vector<8x1xf32>
      %22 = arith.addf %21, %20 : vector<8x1xf32>
      %23 = arith.divf %21, %22 : vector<8x1xf32>
      %c0_14 = arith.constant 0 : index
      %c0_15 = arith.constant 0 : index
      %24 = vector.load %arg5[%c0_14, %c0_15] : memref<8x1xf32, #tpu.memory_space<vmem>>, vector<8x1xf32>
      tpu.vector_store %arg5[%c0_14, %c0_15], %23 {strides = array<i32>} : memref<8x1xf32, #tpu.memory_space<vmem>>, vector<8x1xf32>,
    } else {
    }
    return
  }
  func.func @transform_0(%arg0: i32, %arg1: i32) -> (i32, i32) {
    %c0_i32 = arith.constant 0 : i32
    return %arg0, %arg1 : i32, i32
  }
  func.func @transform_1(%arg0: i32, %arg1: i32) -> (i32, i32) {
    %c0_i32 = arith.constant 0 : i32
    %c0_i32_0 = arith.constant 0 : i32
    return %c0_i32, %arg1 : i32, i32
  }
  func.func @transform_2(%arg0: i32, %arg1: i32) -> i32 {
    %c0_i32 = arith.constant 0 : i32
    %c0_i32_0 = arith.constant 0 : i32
    return %c0_i32 : i32
  }
  func.func @transform_3(%arg0: i32, %arg1: i32) -> (i32, i32) {
    %c0_i32 = arith.constant 0 : i32
    %c0_i32_0 = arith.constant 0 : i32
    return %arg0, %c0_i32 : i32, i32
  }
}

</mosaic_0001>

<bundles_post_ra>
// kernel: tpu_custom_call.1
= control target key start
LH: loop header
LB: loop body
LE: loop exit
PB: predicated region body
PF: predicated region fallthrough
CT: control target
= control target key end

     0   :  { %9 = vsyncpa [#allocation4], 0  ;;  %s101_s12 = smov [#allocation3]   ;;  %s159_s0 = inlined_call_operand.hbm [shape: f32[8,32], index: 0, kind: input, shape index: {}]   ;;  %s160_s1 = inlined_call_operand.vmem [shape: f32[1,32], index: 1, kind: input, shape index: {}]   ;;  %s161_s2 = inlined_call_operand.<no memory space> [shape: f32[1], index: 2, kind: input, shape index: {}]   ;;  %s162_s3 = inlined_call_operand.vmem [shape: f32[8,1], index: 3, kind: output, shape index: {}]  }
   0x1   :  { %s16_s13 = sshll.u32 %s101_s12, 4  ;;  %s77_s16 = scalar_lea.hbm %s159_s0, 128  ;;  %s17_s13 = int_to_ptr.vmem [resolvable:$true] %s16_s13 }
   0x2   :  { %p78_p0 = scmp.ne.s32.totalorder %s159_s0, %s77_s16  ;;  %p81_p1 = scmp.lt.u32.totalorder %s77_s16, %s159_s0 }
   0x4   :  { %p83_p2 = pnand %p81_p1, %p78_p0 }
   0x6   :  { %86 = shalt.err (!%p83_p2)
}
   0x7   :  { %s87_s21 = scalar_lea.vmem %s17_s13, 128  ;;  %p92_p4 = scmp.lt.s32.totalorder %s17_s13, %s17_s13 }
   0x8   :  { %p88_p3 = scmp.ne.s32.totalorder %s17_s13, %s87_s21  ;;  %p93_p5 = scmp.lt.s32.totalorder %s87_s21, %s87_s21 }
   0xa   :  { %p94_p6 = por %p93_p5, %p92_p4 }
   0xc   :  { %p95_p7 = pnand %p94_p6, %p88_p3 }
   0xe   :  { %98 = shalt.err (!%p95_p7)
}
   0xf   :  { %19 = dma.hbm_to_vmem [thread:$0]  %s159_s0, 128, %s17_s13, [#allocation4]  }
  0x10   :  { %99 = dma.done.wait [#allocation4], 128  }
  0x11   :  { %100 = vsyncadd [#allocation4], 4294967168  ;;  %vm31_vm0 = vcmask 7168   ;;  %v102_v0 = vmov 0.0   ;;  %v33_v1 = vld [vmem:[#allocation3] sm:$0xff]  ;;  %vm43_vm1 = vcmask 261120   ;;  %v55_v8 = vstv %s161_s2 }
  0x12   :  { %32 = vst.msk [vmem:[%s162_s3] sm:$0xff] %vm31_vm0, %v102_v0  ;;  %v69_v2 = vld [vmem:[%s160_s1] ss:$0 sm:$0xff] }
  0x13   :  { %v41_v3 = vmul.f32 %v69_v2, %v33_v1 }
  0x15   :  { %v44_v4 = vsel %vm43_vm1, %v41_v3, 0.0 }
  0x16   :  { %45 = vadd.xlane.f32.xlu0 %v44_v4 }
  0x19   :  { %v42_v5 = vld [vmem:[%s162_s3] sm:$0xff] }
  0xa3   :  { %v46_v6 = vpop.xlane.xlu0 %45 }
  0xa4   :  { %v47_v7 = vadd.f32 %v46_v6, %v42_v5 }
  0xa6   :  { %49 = vst.msk [vmem:[%s162_s3] sm:$0xff] %vm31_vm0, %v47_v7 }
  0xad   :  { %v53_v9 = vld [vmem:[%s162_s3] sm:$0xff] }
  0xae   :  { %v56_v10 = vadd.f32 %v55_v8, %v53_v9 }
  0xb0   :  { %v70_v11 = vmul.f32 -1.442695, %v56_v10 }
  0xb2   :  { %73 = vpow2.f32 %v70_v11 }
  0xbc   :  { %v74_v12 = vpop.eup %73 }
  0xbd   :  { %v60_v13 = vadd.f32 1.0, %v74_v12 }
  0xbf   :  { %75 = vrcp.f32 %v60_v13 }
  0xc9   :  { %v76_v14 = vpop.eup %75 }
  0xca   :  { %63 = vst.msk [vmem:[%s162_s3] sm:$0xff] %vm31_vm0, %v76_v14 }
  0xcb   :  { %68 = vsyncpa [#allocation4], 1 }

</bundles_post_ra>
